<compile_context>
chip_gen: v7x
topology: tpu7x:2x2x1
jax: 0.10.0
libtpu: 0.0.40
codegen_flags: <defaults>
</compile_context>

<pallas_src>
import functools

import jax
import jax.numpy as jnp
from jax.experimental import pallas as pl
from jax.experimental.pallas import tpu as pltpu

FC1_UNITS = 400
FC2_UNITS = 300
FC1_PAD = 512      # 400 -> next multiple of 128
FC2_PAD = 384      # 300 -> next multiple of 128
BN_EPS = 1e-5
MAX_TB = 1024      # max batch-tile rows (activations ~4 MiB f32 at 1024)


def _cdiv(a, b):
    return (a + b - 1) // b


def _round_up(x, m):
    return ((x + m - 1) // m) * m


def _tile_plan(B):
    """Pick (TB, n_tiles) for the batch grid.

    - TB is a multiple of 16 (bf16 sublane packing).
    - n_tiles >= 2 whenever B > 16 so the parallel axis can shard across the
      two TensorCores on v7x.
    - TB is derived from B (not a fixed 256) to minimize padded rows.
    """
    B16 = _round_up(max(B, 1), 16)
    if B16 <= 16:
        return B16, 1
    n_tiles = max(2, _cdiv(B16, MAX_TB))
    TB = _round_up(_cdiv(B16, n_tiles), 16)
    return TB, n_tiles


def actor_kernel(x_ref, w1_ref, b1_ref, w2_ref, b2_ref, w3_ref, b3_ref, o_ref):
    # x_ref is bf16; BN affine is already folded into (w1, b1) by the wrapper.
    # All matmuls: bf16 operands on the MXU, f32 accumulation.
    h1 = jnp.dot(x_ref[...], w1_ref[...],
                 preferred_element_type=jnp.float32) + b1_ref[...]
    h1 = jnp.maximum(h1, 0.0)                                  # [TB, 512] f32

    h2 = jnp.dot(h1.astype(jnp.bfloat16), w2_ref[...],
                 preferred_element_type=jnp.float32) + b2_ref[...]
    h2 = jnp.maximum(h2, 0.0)                                  # [TB, 384] f32

    h3 = jnp.dot(h2.astype(jnp.bfloat16), w3_ref[...],
                 preferred_element_type=jnp.float32) + b3_ref[...]
    o_ref[...] = jnp.tanh(h3).astype(o_ref.dtype)              # [TB, A_pad] bf16


@functools.partial(jax.jit, static_argnames=("action_size",))
def actor_forward(state, params, action_size):
    """state: [B, S] float32.  params: dict of padded BN/FC parameters."""
    B, S = state.shape
    A_pad = params["w3"].shape[1]

    x = state.astype(jnp.float32)

    # ---- BatchNorm1d (training mode, biased variance), folded into FC1 ----
    mean = jnp.mean(x, axis=0, keepdims=True)                  # [1, S]
    var = jnp.mean((x - mean) ** 2, axis=0, keepdims=True)     # [1, S]
    scale = params["gamma"] * jax.lax.rsqrt(var + BN_EPS)      # [1, S]
    shift = params["beta"] - mean * scale                      # [1, S]

    w1_f32 = params["w1"]                                      # [S, 512] f32
    w1 = (scale.reshape(S, 1) * w1_f32).astype(jnp.bfloat16)   # BN scale folded
    b1 = shift @ w1_f32 + params["b1"]                         # BN shift folded, [1, 512] f32

    # ---- Batch tiling: minimal zero-row padding, >=2 tiles for v7x ----
    TB, n_tiles = _tile_plan(B)
    B_pad = TB * n_tiles
    if B_pad != B:
        x = jnp.pad(x, ((0, B_pad - B), (0, 0)))
    xb = x.astype(jnp.bfloat16)                                # halve x DMA bytes

    flops = 2 * B_pad * (S * FC1_PAD + FC1_PAD * FC2_PAD + FC2_PAD * A_pad)
    bytes_accessed = (
        B_pad * S * 2 + B_pad * A_pad * 2                            # x, out (bf16)
        + (S * FC1_PAD + FC1_PAD * FC2_PAD + FC2_PAD * A_pad) * 2    # bf16 weights
        + (FC1_PAD + FC2_PAD + A_pad) * 4                            # f32 biases
    )

    const2d = lambda i: (0, 0)
    out = pl.pallas_call(
        actor_kernel,
        out_shape=jax.ShapeDtypeStruct((B_pad, A_pad), jnp.bfloat16),
        grid=(n_tiles,),
        in_specs=[
            pl.BlockSpec((TB, S), lambda i: (i, 0)),        # x (bf16), tiled over batch
            pl.BlockSpec((S, FC1_PAD), const2d),            # w1 (BN-folded, resident)
            pl.BlockSpec((1, FC1_PAD), const2d),            # b1 (BN-folded)
            pl.BlockSpec((FC1_PAD, FC2_PAD), const2d),      # w2
            pl.BlockSpec((1, FC2_PAD), const2d),            # b2
            pl.BlockSpec((FC2_PAD, A_pad), const2d),        # w3
            pl.BlockSpec((1, A_pad), const2d),              # b3
        ],
        out_specs=pl.BlockSpec((TB, A_pad), lambda i: (i, 0)),
        compiler_params=pltpu.CompilerParams(
            dimension_semantics=("parallel",),
            vmem_limit_bytes=32 * 1024 * 1024,
        ),
        cost_estimate=pl.CostEstimate(
            flops=flops,
            transcendentals=B_pad * A_pad,
            bytes_accessed=bytes_accessed,
        ),
    )(xb, w1, b1,
      params["w2"], params["b2"],
      params["w3"], params["b3"])

    return out[:B, :action_size].astype(jnp.float32)


def init_actor_params(state_size, action_size, key):
    """Deterministic synthetic init mirroring the PyTorch module's shapes.

    ExtraInit(layer) uses weight.size()[0] == out_features, so:
      FC1.weight ~ U(-1/sqrt(400), 1/sqrt(400)), FC2.weight ~ U(-1/sqrt(300), ...),
      FC3.weight ~ U(-0.003, 0.003).  Biases use the default Linear init
      U(-1/sqrt(fan_in), 1/sqrt(fan_in)).

    Weights are stored transposed [in, out] and zero-padded to lane-aligned
    shapes (512 / 384 / round_up(A, 128)).  w1 stays f32 (the per-call BN
    affine is folded into it before casting to bf16); w2/w3 are stored bf16
    for the MXU.  Biases stay f32 (added after the f32-accumulated dot).
    """
    ks = jax.random.split(key, 6)
    A_pad = _round_up(action_size, 128)

    def u(k, shape, lim):
        return jax.random.uniform(k, shape, jnp.float32, minval=-lim, maxval=lim)

    lim1 = 1.0 / jnp.sqrt(float(FC1_UNITS))
    lim2 = 1.0 / jnp.sqrt(float(FC2_UNITS))
    b1_lim = 1.0 / jnp.sqrt(float(state_size))
    b2_lim = 1.0 / jnp.sqrt(float(FC1_UNITS))
    b3_lim = 1.0 / jnp.sqrt(float(FC2_UNITS))

    w1 = jnp.zeros((state_size, FC1_PAD), jnp.float32).at[:, :FC1_UNITS].set(
        u(ks[0], (state_size, FC1_UNITS), lim1))
    b1 = jnp.zeros((1, FC1_PAD), jnp.float32).at[:, :FC1_UNITS].set(
        u(ks[1], (1, FC1_UNITS), b1_lim))
    w2 = jnp.zeros((FC1_PAD, FC2_PAD), jnp.float32).at[:FC1_UNITS, :FC2_UNITS].set(
        u(ks[2], (FC1_UNITS, FC2_UNITS), lim2))
    b2 = jnp.zeros((1, FC2_PAD), jnp.float32).at[:, :FC2_UNITS].set(
        u(ks[3], (1, FC2_UNITS), b2_lim))
    w3 = jnp.zeros((FC2_UNITS, A_pad), jnp.float32).at[:, :action_size].set(
        u(ks[4], (FC2_UNITS, action_size), 0.003))
    w3 = jnp.pad(w3, ((0, FC2_PAD - FC2_UNITS), (0, 0)))
    b3 = jnp.zeros((1, A_pad), jnp.float32).at[:, :action_size].set(
        u(ks[5], (1, action_size), b3_lim))

    return {
        "gamma": jnp.ones((1, state_size), jnp.float32),
        "beta": jnp.zeros((1, state_size), jnp.float32),
        "w1": w1, "b1": b1,                          # f32 (folded per call)
        "w2": w2.astype(jnp.bfloat16), "b2": b2,
        "w3": w3.astype(jnp.bfloat16), "b3": b3,
    }


def actor_reference(state, params, action_size):
    """Pure-JAX f32 reference of the same forward pass."""
    x = state.astype(jnp.float32)
    mean = jnp.mean(x, axis=0, keepdims=True)
    var = jnp.mean((x - mean) ** 2, axis=0, keepdims=True)
    xn = (x - mean) * jax.lax.rsqrt(var + BN_EPS)
    xn = xn * params["gamma"] + params["beta"]
    h1 = jnp.maximum(xn @ params["w1"] + params["b1"], 0.0)
    h2 = jnp.maximum(h1 @ params["w2"].astype(jnp.float32) + params["b2"], 0.0)
    out = jnp.tanh(h2 @ params["w3"].astype(jnp.float32) + params["b3"])
    return out[:, :action_size]


if __name__ == "__main__":
    key = jax.random.PRNGKey(0)
    k_x, k_p = jax.random.split(key)

    batch = 20           # not a multiple of 16 -> exercises row padding + 2-tile grid
    state_size = 32
    action_size = 8

    state = jax.random.normal(k_x, (batch, state_size), jnp.float32)
    params = init_actor_params(state_size, action_size, k_p)

    out = actor_forward(state, params, action_size)
    out = jax.block_until_ready(out)

    ref = actor_reference(state, params, action_size)
    assert out.shape == (batch, action_size)
    # bf16 MXU operands + bf16 output vs f32 reference -> loose-ish tolerance
    assert jnp.allclose(out, ref, atol=2e-2, rtol=2e-2), \
        f"max abs err {jnp.max(jnp.abs(out - ref))}"

    print("KERNEL_OK")
</pallas_src>

<mosaic_0001>
module attributes {stable_mosaic.version = 11 : i64} {
  func.func @actor_kernel(%arg0: i32, %arg1: memref<16x32xbf16, #tpu.memory_space<vmem>>, %arg2: memref<32x512xbf16, #tpu.memory_space<vmem>>, %arg3: memref<1x512xf32, #tpu.memory_space<vmem>>, %arg4: memref<512x384xbf16, #tpu.memory_space<vmem>>, %arg5: memref<1x384xf32, #tpu.memory_space<vmem>>, %arg6: memref<384x128xbf16, #tpu.memory_space<vmem>>, %arg7: memref<1x128xf32, #tpu.memory_space<vmem>>, %arg8: memref<16x128xbf16, #tpu.memory_space<vmem>>) attributes {dimension_semantics = [#tpu.dimension_semantics<parallel>], iteration_bounds = array<i64: 2>, scalar_prefetch = 0 : i64, scratch_operands = 0 : i64, tpu.core_type = #tpu.core_type<tc>, window_params = [{transform_indices = @transform_0, window_bounds = array<i64: 16, 32>}, {pipeline_mode = #tpu.pipeline_mode<synchronous>, transform_indices = @transform_1, window_bounds = array<i64: 32, 512>}, {pipeline_mode = #tpu.pipeline_mode<synchronous>, transform_indices = @transform_2, window_bounds = array<i64: 1, 512>}, {pipeline_mode = #tpu.pipeline_mode<synchronous>, transform_indices = @transform_3, window_bounds = array<i64: 512, 384>}, {pipeline_mode = #tpu.pipeline_mode<synchronous>, transform_indices = @transform_4, window_bounds = array<i64: 1, 384>}, {pipeline_mode = #tpu.pipeline_mode<synchronous>, transform_indices = @transform_5, window_bounds = array<i64: 384, 128>}, {pipeline_mode = #tpu.pipeline_mode<synchronous>, transform_indices = @transform_6, window_bounds = array<i64: 1, 128>}, {transform_indices = @transform_7, window_bounds = array<i64: 16, 128>}]} {
    %c0 = arith.constant 0 : index
    %c0_0 = arith.constant 0 : index
    %0 = vector.load %arg1[%c0, %c0_0] : memref<16x32xbf16, #tpu.memory_space<vmem>>, vector<16x32xbf16>
    %c0_1 = arith.constant 0 : index
    %c0_2 = arith.constant 0 : index
    %1 = vector.load %arg2[%c0_1, %c0_2] : memref<32x512xbf16, #tpu.memory_space<vmem>>, vector<32x512xbf16>
    %cst = arith.constant dense<0.000000e+00> : vector<16x512xf32>
    %2 = tpu.matmul %0, %1, %cst {dimension_numbers = #tpu.dot_dimension_numbers<[1], [0], [0], [1], [0, 0, 1, 1], [], []>} : vector<16x32xbf16>, vector<32x512xbf16>, vector<16x512xf32> -> vector<16x512xf32>
    %c0_3 = arith.constant 0 : index
    %c0_4 = arith.constant 0 : index
    %3 = vector.load %arg3[%c0_3, %c0_4] : memref<1x512xf32, #tpu.memory_space<vmem>>, vector<1x512xf32>
    %4 = vector.broadcast %3 : vector<1x512xf32> to vector<16x512xf32>
    %5 = arith.addf %2, %4 : vector<16x512xf32>
    %cst_5 = arith.constant 0.000000e+00 : f32
    %6 = vector.broadcast %cst_5 : f32 to vector<16x512xf32>
    %7 = arith.maximumf %5, %6 : vector<16x512xf32>
    %8 = arith.truncf %7 : vector<16x512xf32> to vector<16x512xbf16>
    %c0_6 = arith.constant 0 : index
    %c0_7 = arith.constant 0 : index
    %9 = vector.load %arg4[%c0_6, %c0_7] : memref<512x384xbf16, #tpu.memory_space<vmem>>, vector<512x384xbf16>
    %cst_8 = arith.constant dense<0.000000e+00> : vector<16x384xf32>
    %10 = tpu.matmul %8, %9, %cst_8 {dimension_numbers = #tpu.dot_dimension_numbers<[1], [0], [0], [1], [0, 0, 1, 1], [], []>} : vector<16x512xbf16>, vector<512x384xbf16>, vector<16x384xf32> -> vector<16x384xf32>
    %c0_9 = arith.constant 0 : index
    %c0_10 = arith.constant 0 : index
    %11 = vector.load %arg5[%c0_9, %c0_10] : memref<1x384xf32, #tpu.memory_space<vmem>>, vector<1x384xf32>
    %12 = vector.broadcast %11 : vector<1x384xf32> to vector<16x384xf32>
    %13 = arith.addf %10, %12 : vector<16x384xf32>
    %cst_11 = arith.constant 0.000000e+00 : f32
    %14 = vector.broadcast %cst_11 : f32 to vector<16x384xf32>
    %15 = arith.maximumf %13, %14 : vector<16x384xf32>
    %16 = arith.truncf %15 : vector<16x384xf32> to vector<16x384xbf16>
    %c0_12 = arith.constant 0 : index
    %c0_13 = arith.constant 0 : index
    %17 = vector.load %arg6[%c0_12, %c0_13] : memref<384x128xbf16, #tpu.memory_space<vmem>>, vector<384x128xbf16>
    %cst_14 = arith.constant dense<0.000000e+00> : vector<16x128xf32>
    %18 = tpu.matmul %16, %17, %cst_14 {dimension_numbers = #tpu.dot_dimension_numbers<[1], [0], [0], [1], [0, 0, 1, 1], [], []>} : vector<16x384xbf16>, vector<384x128xbf16>, vector<16x128xf32> -> vector<16x128xf32>
    %c0_15 = arith.constant 0 : index
    %c0_16 = arith.constant 0 : index
    %19 = vector.load %arg7[%c0_15, %c0_16] : memref<1x128xf32, #tpu.memory_space<vmem>>, vector<1x128xf32>
    %20 = vector.broadcast %19 : vector<1x128xf32> to vector<16x128xf32>
    %21 = arith.addf %18, %20 : vector<16x128xf32>
    %22 = math.tanh %21 : vector<16x128xf32>
    %23 = arith.truncf %22 : vector<16x128xf32> to vector<16x128xbf16>
    %c0_17 = arith.constant 0 : index
    %c0_18 = arith.constant 0 : index
    %24 = vector.load %arg8[%c0_17, %c0_18] : memref<16x128xbf16, #tpu.memory_space<vmem>>, vector<16x128xbf16>
    tpu.vector_store %arg8[%c0_17, %c0_18], %23 {strides = array<i32>} : memref<16x128xbf16, #tpu.memory_space<vmem>>, vector<16x128xbf16>,
    return
  }
  func.func @transform_0(%arg0: i32) -> (i32, i32) {
    %c0_i32 = arith.constant 0 : i32
    %c0_i32_0 = arith.constant 0 : i32
    return %arg0, %c0_i32 : i32, i32
  }
  func.func @transform_1(%arg0: i32) -> (i32, i32) {
    %c0_i32 = arith.constant 0 : i32
    %c0_i32_0 = arith.constant 0 : i32
    %c0_i32_1 = arith.constant 0 : i32
    return %c0_i32, %c0_i32_0 : i32, i32
  }
  func.func @transform_2(%arg0: i32) -> (i32, i32) {
    %c0_i32 = arith.constant 0 : i32
    %c0_i32_0 = arith.constant 0 : i32
    %c0_i32_1 = arith.constant 0 : i32
    return %c0_i32, %c0_i32_0 : i32, i32
  }
  func.func @transform_3(%arg0: i32) -> (i32, i32) {
    %c0_i32 = arith.constant 0 : i32
    %c0_i32_0 = arith.constant 0 : i32
    %c0_i32_1 = arith.constant 0 : i32
    return %c0_i32, %c0_i32_0 : i32, i32
  }
  func.func @transform_4(%arg0: i32) -> (i32, i32) {
    %c0_i32 = arith.constant 0 : i32
    %c0_i32_0 = arith.constant 0 : i32
    %c0_i32_1 = arith.constant 0 : i32
    return %c0_i32, %c0_i32_0 : i32, i32
  }
  func.func @transform_5(%arg0: i32) -> (i32, i32) {
    %c0_i32 = arith.constant 0 : i32
    %c0_i32_0 = arith.constant 0 : i32
    %c0_i32_1 = arith.constant 0 : i32
    return %c0_i32, %c0_i32_0 : i32, i32
  }
  func.func @transform_6(%arg0: i32) -> (i32, i32) {
    %c0_i32 = arith.constant 0 : i32
    %c0_i32_0 = arith.constant 0 : i32
    %c0_i32_1 = arith.constant 0 : i32
    return %c0_i32, %c0_i32_0 : i32, i32
  }
  func.func @transform_7(%arg0: i32) -> (i32, i32) {
    %c0_i32 = arith.constant 0 : i32
    %c0_i32_0 = arith.constant 0 : i32
    return %arg0, %c0_i32 : i32, i32
  }
}

</mosaic_0001>

<bundles_post_ra>
// kernel: actor_forward.1
= control target key start
LH: loop header
LB: loop body
LE: loop exit
PB: predicated region body
PF: predicated region fallthrough
CT: control target
= control target key end

     0   :  { %12 = vsyncpa [#allocation3], 0  ;;  %s2208_s24 = smov 0   ;;  %s2410_s0 = inlined_call_operand.vmem [shape: bf16[32,32], index: 0, kind: input, shape index: {}]   ;;  %s2411_s1 = inlined_call_operand.vmem [shape: bf16[32,512], index: 1, kind: input, shape index: {}]   ;;  %s2412_s2 = inlined_call_operand.vmem [shape: f32[1,512], index: 2, kind: input, shape index: {}]   ;;  %s2413_s3 = inlined_call_operand.hbm [shape: bf16[512,384], index: 3, kind: input, shape index: {}]   ;;  %s2414_s4 = inlined_call_operand.vmem [shape: f32[1,384], index: 4, kind: input, shape index: {}]   ;;  %s2415_s5 = inlined_call_operand.vmem [shape: bf16[384,128], index: 5, kind: input, shape index: {}]   ;;  %s2416_s6 = inlined_call_operand.vmem [shape: f32[1,128], index: 6, kind: input, shape index: {}]   ;;  %s2417_s7 = inlined_call_operand.vmem [shape: bf16[32,128], index: 7, kind: output, shape index: {}]  }
   0x1 LB: > { %s1672_s25 = sadd.s32 4294967295, %s2160_s24   ;;  %p1674_p0 = scmp.ge.s32.totalorder %s2160_s24, 1  ;;  %s2160_s24 = sphi %s2208_s24, %s18_s24  }
   0x2   : > { %p201_p1 = scmp.lt.s32.totalorder %s2160_s24, 3  ;;  %s2162_s26 = smov [#allocation2]  }
   0x3   : > { %s219_s27 = sshll.u32 %s2162_s26, 4  ;;  %p2222_p3 = scmp.eq.s32.totalorder %s1672_s25, 0  ;;  %s220_s27 = int_to_ptr.vmem [resolvable:$true] %s219_s27 }
   0x4   : > { %p2216_p2 = pnand %p1674_p0, %p201_p1  ;;  %s2122_s10 = scalar_lea.hbm %s2413_s3, 12288 }
   0x5   : > { %s2422_s29 = scalar_select %p2222_p3, 1, 0 }
   0x6   : > { %s2421_s28 = scalar_select %p2216_p2, 1, 0 }
   0x7   : > { %p1933_p4 = pneg %p2216_p2  ;;  %p2123_p6 = scmp.ne.s32.totalorder %s2413_s3, %s2122_s10 }
   0x8   : > { %p2129_p10 = scmp.lt.u32.totalorder %s2122_s10, %s2413_s3 }
   0x9   : > { %p2230_p5 = pnand %p2222_p3, %p1933_p4 }
   0xb   : > { %p2124_p7 = pneg %p2230_p5 }
   0xd   : > { %p2125_p8 = pnand %p2124_p7, %p2123_p6 }
   0xf   : > { %p2126_p9 = pneg %p2125_p8 }
  0x11   : > { %p2131_p11 = pnand %p2129_p10, %p2126_p9 }
  0x13   : > { %2134 = shalt.err (!%p2131_p11)
}
  0x14   : > { %s2135_s15 = scalar_lea.vmem %s220_s27, 12288  ;;  %p2143_p1 = scmp.lt.s32.totalorder %s220_s27, %s220_s27 }
  0x15   : > { %p2136_p12 = scmp.ne.s32.totalorder %s220_s27, %s2135_s15  ;;  %p2144_p4 = scmp.lt.s32.totalorder %s2135_s15, %s2135_s15 }
  0x17   : > { %p2138_p13 = pnand %p2136_p12, %p2124_p7  ;;  %p2145_p3 = por %p2144_p4, %p2143_p1 }
  0x19   : > { %p2139_p0 = pneg %p2138_p13 }
  0x1b   : > { %p2146_p2 = pnand %p2145_p3, %p2139_p0 }
  0x1d   : > { %2149 = shalt.err (!%p2146_p2)
}
  0x1e   : > { %s2163_s16 = smov 192   ;;  %s2164_s17 = smov 12  }
  0x1f   : > { %1936 = dma.hbm_to_vmem [thread:$0]  (!%p2230_p5), %s2413_s3, 12288, %s220_s27, [#allocation3], %s2163_s16, %s2163_s16, %s2164_s17  }
  0x20   : > { %p2424_p6 = scmp.ne.s32.totalorder %s2421_s28, 0 }
  0x21   : > { %p2425_p8 = scmp.ne.s32.totalorder (!%p2424_p6), %s2422_s29, 0 }
  0x22   : > { %253 = sbr.rel (%p2424_p6) target bundleno = 822 (0x336), region = 48 }
  0x29   : > { %2155 = dma.done.wait (%p2425_p8), [#allocation3], 12288  }
  0x2a   : > { %2157 = vsyncadd (%p2425_p8), [#allocation3], 4294955008  ;;  %s1679_s20 = sshll.u32 %s1672_s25, 1  ;;  %v2165_v0 = vmov 0   ;;  %v1953_v1 = vld [vmem:[%s2411_s1 + $0x4] ss:$16 sps:$4 sm:$0xff]   ;;  %v310_v60 = vlaneseq }
  0x2b   : > { %411 = vmatprep.mubr.bf16.mxu0 %v2165_v0  ;;  %p286_p2 = scmp.lt.s32.totalorder %s1679_s20, 3  ;;  %454 = vmatprep.mubr.bf16.mxu1 %v2165_v0  ;;  %v1955_v2 = vld [vmem:[%s2411_s1] ss:$16 sps:$4 sm:$0xff]   ;;  %v1956_v3 = vld [vmem:[%s2411_s1 + $0x24] ss:$16 sps:$4 sm:$0xff]   ;;  %vm375_vm0 = vcmask 261120  }
  0x2c   : > { %379 = vmatprep.subr.bf16.mxu0 %v1953_v1  ;;  %v1958_v4 = vld [vmem:[%s2411_s1 + $0x20] ss:$16 sps:$4 sm:$0xff]   ;;  %v1960_v6 = vld [vmem:[%s2411_s1 + $0xc] ss:$16 sps:$4 sm:$0xff]   ;;  %v1962_v7 = vld [vmem:[%s2411_s1 + $0x8] ss:$16 sps:$4 sm:$0xff]  }
  0x2d   : > { %s2427_s20 = smov (!%p286_p2, %s1679_s20), 3  ;;  %380 = vmatpush1.bf16.msra.mxu0 %v1955_v2  ;;  %v1963_v8 = vld [vmem:[%s2411_s1 + $0x2c] ss:$16 sps:$4 sm:$0xff]   ;;  %422 = vmatprep.subr.bf16.mxu1 %v1960_v6  ;;  %v1965_v9 = vld [vmem:[%s2411_s1 + $0x28] ss:$16 sps:$4 sm:$0xff]   ;;  %v2290_v61 = vshrl.u32 %v310_v60, 7 }
  0x2e   : > { %s1680_s21 = sshll.u32 %s2427_s20, 2  ;;  %381 = vmatprep.subr.bf16.mxu0 %v1956_v3  ;;  %423 = vmatpush1.bf16.msra.mxu1 %v1962_v7  ;;  %v1966_v10 = vld [vmem:[#allocation2] ss:$12 sps:$4 sm:$0xff]   ;;  %v1968_v11 = vld [vmem:[#allocation2 + $0x4] ss:$12 sps:$4 sm:$0xff]   ;;  %vm2167_vm1 = vmmov 0  }
  0x2f   : > { %s289_s29 = scalar_lea.vmem %s2410_s0, %s1680_s21  ;;  %424 = vmatprep.subr.bf16.mxu1 %v1963_v8  ;;  %v1971_v12 = vld [vmem:[#allocation2 + $0x1c] ss:$12 sps:$4 sm:$0xff]   ;;  %v1969_v13 = vld [vmem:[#allocation2 + $0x18] ss:$12 sps:$4 sm:$0xff]   ;;  %v1974_v14 = vld [vmem:[#allocation2 + $0x34] ss:$12 sps:$4 sm:$0xff]   ;;  %s295_s15 = scalar_lea.vmem %s2417_s7, %s1680_s21 }
  0x30   : > { %v1959_v5 = vld [vmem:[%s289_s29] sm:$0xff]   ;;  %v1972_v15 = vld [vmem:[#allocation2 + $0x30] ss:$12 sps:$4 sm:$0xff]   ;;  %v1977_v16 = vld [vmem:[#allocation2 + $0x4c] ss:$12 sps:$4 sm:$0xff]   ;;  %v312_v62 = vsub.s32 0, %v2290_v61 }
  0x31   : > { %382 = vmatpush1.bf16.msra.mxu0 %v1958_v4  ;;  %v1975_v17 = vld [vmem:[#allocation2 + $0x48] ss:$12 sps:$4 sm:$0xff]   ;;  %v1980_v18 = vld [vmem:[#allocation2 + $0x64] ss:$12 sps:$4 sm:$0xff]   ;;  %v1978_v21 = vld [vmem:[#allocation2 + $0x60] ss:$12 sps:$4 sm:$0xff]  }
  0x32   : > { %1134 = vmatprep.subr.bf16.mxu0 %v1968_v11  ;;  %425 = vmatpush1.bf16.msra.mxu1 %v1965_v9  ;;  %v1993_v19 = vld [vmem:[#allocation2 + $0xc8] ss:$12 sps:$4 sm:$0xff]   ;;  %v1998_v22 = vld [vmem:[#allocation2 + $0xe0] ss:$12 sps:$4 sm:$0xff]   ;;  %v2003_v25 = vld [vmem:[#allocation2 + $0xf8] ss:$12 sps:$4 sm:$0xff]  }
  0x33   : > { %v1994_v20 = vld [vmem:[#allocation2 + $0x8] ss:$12 sps:$4 sm:$0xff]   ;;  %1826 = vmatprep.subr.bf16.mxu1 %v1993_v19  ;;  %v1999_v23 = vld [vmem:[#allocation2 + $0x20] ss:$12 sps:$4 sm:$0xff]   ;;  %v2004_v26 = vld [vmem:[#allocation2 + $0x38] ss:$12 sps:$4 sm:$0xff]  }
  0x34   : > { %1692 = vmatmul.mubr.msk.bf16.vlgmr.msra.gmra.mrb[0].mxu0 %vm375_vm0, %v1959_v5  ;;  %v1983_v24 = vld [vmem:[#allocation2 + $0x7c] ss:$12 sps:$4 sm:$0xff]   ;;  %v1981_v27 = vld [vmem:[#allocation2 + $0x78] ss:$12 sps:$4 sm:$0xff]   ;;  %v1986_v28 = vld [vmem:[#allocation2 + $0x94] ss:$12 sps:$4 sm:$0xff]  }
  0x35   : > { %1135 = vmatpush1.bf16.msra.mxu0 %v1966_v10  ;;  %1693 = vmatmul.mubr.msk.bf16.vlgmr.msra.gmra.mrb[0].mxu1 %vm375_vm0, %v1959_v5  ;;  %v2008_v29 = vld [vmem:[#allocation2 + $0x110] ss:$12 sps:$4 sm:$0xff]   ;;  %v1989_v32 = vld [vmem:[#allocation2 + $0xac] ss:$12 sps:$4 sm:$0xff]   ;;  %v2013_v33 = vld [vmem:[#allocation2 + $0x128] ss:$12 sps:$4 sm:$0xff]  }
  0x36   : > { %1136 = vmatprep.subr.bf16.mxu0 %v1971_v12  ;;  %1827 = vmatpush3.bf16.msra.mxu1 %v1994_v20  ;;  %v2009_v30 = vld [vmem:[#allocation2 + $0x50] ss:$12 sps:$4 sm:$0xff]   ;;  %v1987_v34 = vld [vmem:[#allocation2 + $0xa8] ss:$12 sps:$4 sm:$0xff]   ;;  %v2018_v36 = vld [vmem:[#allocation2 + $0x140] ss:$12 sps:$4 sm:$0xff]  }
  0x37   : > { %1828 = vmatprep.subr.bf16.mxu1 %v1998_v22  ;;  %v1984_v31 = vld [vmem:[#allocation2 + $0x90] ss:$12 sps:$4 sm:$0xff]   ;;  %v2014_v35 = vld [vmem:[#allocation2 + $0x68] ss:$12 sps:$4 sm:$0xff]   ;;  %v1990_v38 = vld [vmem:[#allocation2 + $0xc0] ss:$12 sps:$4 sm:$0xff]  }
  0x38   : > { %v1992_v37 = vld [vmem:[#allocation2 + $0xc4] ss:$12 sps:$4 sm:$0xff]   ;;  %v2019_v39 = vld [vmem:[#allocation2 + $0x80] ss:$12 sps:$4 sm:$0xff]   ;;  %v1997_v40 = vld [vmem:[#allocation2 + $0xdc] ss:$12 sps:$4 sm:$0xff]  }
  0x39   : > { %1137 = vmatpush1.bf16.msra.mxu0 %v1969_v13  ;;  %v1995_v41 = vld [vmem:[#allocation2 + $0xd8] ss:$12 sps:$4 sm:$0xff]   ;;  %v2002_v42 = vld [vmem:[#allocation2 + $0xf4] ss:$12 sps:$4 sm:$0xff]   ;;  %v2000_v43 = vld [vmem:[#allocation2 + $0xf0] ss:$12 sps:$4 sm:$0xff]  }
  0x3a   : > { %1138 = vmatprep.subr.bf16.mxu0 %v1974_v14  ;;  %1829 = vmatpush3.bf16.msra.mxu1 %v1999_v23  ;;  %v2007_v44 = vld [vmem:[#allocation2 + $0x10c] ss:$12 sps:$4 sm:$0xff]   ;;  %v2005_v45 = vld [vmem:[#allocation2 + $0x108] ss:$12 sps:$4 sm:$0xff]   ;;  %v2012_v46 = vld [vmem:[#allocation2 + $0x124] ss:$12 sps:$4 sm:$0xff]  }
  0x3b   : > { %1830 = vmatprep.subr.bf16.mxu1 %v2003_v25  ;;  %v2010_v47 = vld [vmem:[#allocation2 + $0x120] ss:$12 sps:$4 sm:$0xff]   ;;  %v2017_v48 = vld [vmem:[#allocation2 + $0x13c] ss:$12 sps:$4 sm:$0xff]   ;;  %v2015_v49 = vld [vmem:[#allocation2 + $0x138] ss:$12 sps:$4 sm:$0xff]  }
  0x3c   : > { %v2022_v50 = vld [vmem:[#allocation2 + $0x154] ss:$12 sps:$4 sm:$0xff]   ;;  %v2023_v51 = vld [vmem:[#allocation2 + $0x158] ss:$12 sps:$4 sm:$0xff]   ;;  %v2020_v52 = vld [vmem:[#allocation2 + $0x150] ss:$12 sps:$4 sm:$0xff]  }
  0x3d   : > { %1139 = vmatpush1.bf16.msra.mxu0 %v1972_v15  ;;  %v2024_v53 = vld [vmem:[#allocation2 + $0x98] ss:$12 sps:$4 sm:$0xff]   ;;  %v2028_v55 = vld [vmem:[#allocation2 + $0x170] ss:$12 sps:$4 sm:$0xff]   ;;  %v2025_v56 = vld [vmem:[#allocation2 + $0x168] ss:$12 sps:$4 sm:$0xff]  }
  0x3e   : > { %1140 = vmatprep.subr.bf16.mxu0 %v1977_v16  ;;  %1831 = vmatpush3.bf16.msra.mxu1 %v2004_v26  ;;  %v2027_v54 = vld [vmem:[#allocation2 + $0x16c] ss:$12 sps:$4 sm:$0xff]   ;;  %v2029_v57 = vld [vmem:[#allocation2 + $0xb0] ss:$12 sps:$4 sm:$0xff]   ;;  %v2033_v59 = vld [vmem:[#allocation2 + $0x248] ss:$12 sps:$4 sm:$0xff]  }
  0x3f   : > { %1832 = vmatprep.subr.bf16.mxu1 %v2008_v29  ;;  %v2032_v58 = vld [vmem:[#allocation2 + $0x184] ss:$12 sps:$4 sm:$0xff]   ;;  %v308_v63 = vld [vmem:[%s2412_s2] sm:$0xf]  ;;  %v316_v0 = vsub.s32 1, %v2290_v61  ;;  %v320_v2 = vsub.s32 2, %v2290_v61 }
  0x40   : > { %v313_v1 = vrot.slane %v308_v63, %v312_v62  ;;  %v324_v4 = vsub.s32 3, %v2290_v61  ;;  %v2030_v29 = vld [vmem:[#allocation2 + $0x180] ss:$12 sps:$4 sm:$0xff]   ;;  %v2064_v60 = vld [vmem:[#allocation2 + $0x218] ss:$12 sps:$4 sm:$0xff]  }
  0x41   : > { %1141 = vmatpush1.bf16.msra.mxu0 %v1975_v17  ;;  %v317_v3 = vrot.slane %v308_v63, %v316_v0  ;;  %v321_v8 = vrot.slane %v308_v63, %v320_v2  ;;  %v2111_v61 = vld [vmem:[%s2415_s5 + $0x88] sm:$0xff]  }
  0x42   : > { %1142 = vmatprep.subr.bf16.mxu0 %v1980_v18  ;;  %1833 = vmatpush3.bf16.msra.mxu1 %v2009_v30  ;;  %v325_v11 = vrot.slane %v308_v63, %v324_v4  ;;  %v2034_v30 = vld [vmem:[#allocation2 + $0x188] ss:$12 sps:$4 sm:$0xff]   ;;  %v2067_v63 = vld [vmem:[#allocation2 + $0x22c] ss:$12 sps:$4 sm:$0xff]   ;;  %v2069_v4 = vld [vmem:[#allocation2 + $0x230] ss:$12 sps:$4 sm:$0xff]  }
  0x43   : > { %1834 = vmatprep.subr.bf16.mxu1 %v2013_v33  ;;  %v2037_v33 = vld [vmem:[#allocation2 + $0x19c] ss:$12 sps:$4 sm:$0xff]  }
  0x45   : > { %1143 = vmatpush1.bf16.msra.mxu0 %v1978_v21 }
  0x46   : > { %1144 = vmatprep.subr.bf16.mxu0 %v1983_v24  ;;  %1835 = vmatpush3.bf16.msra.mxu1 %v2014_v35 }
  0x47   : > { %1836 = vmatprep.subr.bf16.mxu1 %v2018_v36 }
  0x49   : > { %1145 = vmatpush1.bf16.msra.mxu0 %v1981_v27 }
  0x4a   : > { %1146 = vmatprep.subr.bf16.mxu0 %v1986_v28  ;;  %1837 = vmatpush3.bf16.msra.mxu1 %v2019_v39  ;;  %v2039_v39 = vld [vmem:[#allocation2 + $0x1a0] ss:$12 sps:$4 sm:$0xff]  }
  0x4b   : > { %1838 = vmatprep.subr.bf16.mxu1 %v2023_v51  ;;  %v2050_v51 = vld [vmem:[#allocation2 + $0x1e0] ss:$12 sps:$4 sm:$0xff]  }
  0x4d   : > { %1147 = vmatpush1.bf16.msra.mxu0 %v1984_v31 }
  0x4e   : > { %1148 = vmatprep.subr.bf16.mxu0 %v1989_v32  ;;  %1839 = vmatpush3.bf16.msra.mxu1 %v2024_v53  ;;  %v2057_v53 = vld [vmem:[#allocation2 + $0x1fc] ss:$12 sps:$4 sm:$0xff]  }
  0x4f   : > { %1840 = vmatprep.subr.bf16.mxu1 %v2028_v55  ;;  %v2055_v55 = vld [vmem:[#allocation2 + $0x1f8] ss:$12 sps:$4 sm:$0xff]  }
  0x51   : > { %1149 = vmatpush1.bf16.msra.mxu0 %v1987_v34  ;;  %v2038_v34 = vld [vmem:[#allocation2 + $0x260] ss:$12 sps:$4 sm:$0xff]  }
  0x52   : > { %1150 = vmatprep.subr.bf16.mxu0 %v1992_v37  ;;  %1841 = vmatpush3.bf16.msra.mxu1 %v2029_v57  ;;  %v2062_v57 = vld [vmem:[#allocation2 + $0x214] ss:$12 sps:$4 sm:$0xff]  }
  0x53   : > { %1848 = vmatprep.subr.bf16.mxu1 %v2033_v59  ;;  %v2060_v59 = vld [vmem:[#allocation2 + $0x210] ss:$12 sps:$4 sm:$0xff]  }
  0x55   : > { %1151 = vmatpush1.bf16.msra.mxu0 %v1990_v38  ;;  %v2035_v38 = vld [vmem:[#allocation2 + $0x198] ss:$12 sps:$4 sm:$0xff]  }
  0x56   : > { %1152 = vmatprep.subr.bf16.mxu0 %v1997_v40 }
  0x59   : > { %1153 = vmatpush1.bf16.msra.mxu0 %v1995_v41  ;;  %v2042_v41 = vld [vmem:[#allocation2 + $0x1b4] ss:$12 sps:$4 sm:$0xff]  }
  0x5a   : > { %1154 = vmatprep.subr.bf16.mxu0 %v2002_v42  ;;  %v2043_v42 = vld [vmem:[#allocation2 + $0x278] ss:$12 sps:$4 sm:$0xff]  }
  0x5d   : > { %1155 = vmatpush1.bf16.msra.mxu0 %v2000_v43  ;;  %v2040_v43 = vld [vmem:[#allocation2 + $0x1b0] ss:$12 sps:$4 sm:$0xff]  }
  0x5e   : > { %1156 = vmatprep.subr.bf16.mxu0 %v2007_v44  ;;  %v2044_v44 = vld [vmem:[#allocation2 + $0x1b8] ss:$12 sps:$4 sm:$0xff]  }
  0x61   : > { %1157 = vmatpush1.bf16.msra.mxu0 %v2005_v45  ;;  %v2047_v45 = vld [vmem:[#allocation2 + $0x1cc] ss:$12 sps:$4 sm:$0xff]  }
  0x62   : > { %1158 = vmatprep.subr.bf16.mxu0 %v2012_v46  ;;  %v2048_v46 = vld [vmem:[#allocation2 + $0x290] ss:$12 sps:$4 sm:$0xff]  }
  0x65   : > { %1159 = vmatpush1.bf16.msra.mxu0 %v2010_v47  ;;  %v2045_v47 = vld [vmem:[#allocation2 + $0x1c8] ss:$12 sps:$4 sm:$0xff]  }
  0x66   : > { %1160 = vmatprep.subr.bf16.mxu0 %v2017_v48  ;;  %v2049_v48 = vld [vmem:[#allocation2 + $0x1d0] ss:$12 sps:$4 sm:$0xff]  }
  0x69   : > { %1161 = vmatpush1.bf16.msra.mxu0 %v2015_v49  ;;  %v2052_v49 = vld [vmem:[#allocation2 + $0x1e4] ss:$12 sps:$4 sm:$0xff]  }
  0x6a   : > { %1162 = vmatprep.subr.bf16.mxu0 %v2022_v50  ;;  %v2053_v50 = vld [vmem:[#allocation2 + $0x2a8] ss:$12 sps:$4 sm:$0xff]  }
  0x6d   : > { %1163 = vmatpush1.bf16.msra.mxu0 %v2020_v52  ;;  %v2054_v52 = vld [vmem:[#allocation2 + $0x1e8] ss:$12 sps:$4 sm:$0xff]  }
  0x6e   : > { %1164 = vmatprep.subr.bf16.mxu0 %v2027_v54  ;;  %v2058_v54 = vld [vmem:[#allocation2 + $0x2c0] ss:$12 sps:$4 sm:$0xff]  }
  0x71   : > { %1165 = vmatpush1.bf16.msra.mxu0 %v2025_v56  ;;  %v2059_v56 = vld [vmem:[#allocation2 + $0x200] ss:$12 sps:$4 sm:$0xff]  }
  0x72   : > { %1177 = vmatprep.subr.bf16.mxu0 %v2032_v58  ;;  %v2063_v58 = vld [vmem:[#allocation2 + $0x2d8] ss:$12 sps:$4 sm:$0xff]  }
 0x107   : > { %v413_v5 = vpop.f32.mrb[0].mxu0 }
 0x108   : > { %v414_v6 = vadd.f32 %v413_v5, %v313_v1  ;;  %v415_v7 = vpop.f32.mrb[1].mxu0  ;;  %v456_v15 = vpop.f32.mrb[0].mxu1  ;;  %v2072_v5 = vld [vmem:[#allocation2 + $0x244] ss:$12 sps:$4 sm:$0xff]  }
 0x109   : > { %v416_v9 = vadd.f32 %v415_v7, %v317_v3  ;;  %v417_v10 = vpop.f32.mrb[2].mxu0  ;;  %v457_v18 = vadd.f32 %v456_v15, %v321_v8  ;;  %v458_v19 = vpop.f32.mrb[1].mxu1  ;;  %v2075_v7 = vld [vmem:[#allocation2 + $0x25c] ss:$12 sps:$4 sm:$0xff]  }
 0x10a   : > { %v418_v12 = vadd.f32 %v417_v10, %v313_v1  ;;  %v419_v13 = vpop.f32.mrb[3].mxu0  ;;  %v465_v16 = vmax.f32 %v414_v6, 0.0  ;;  %v459_v22 = vadd.f32 %v458_v19, %v325_v11  ;;  %v460_v23 = vpop.f32.mrb[2].mxu1  ;;  %v2068_v1 = vld [vmem:[#allocation2 + $0x2f0] ss:$12 sps:$4 sm:$0xff]  }
 0x10b   : > { %v420_v14 = vadd.f32 %v419_v13, %v317_v3  ;;  %v466_v20 = vmax.f32 %v416_v9, 0.0  ;;  %v467_v25 = vmax.f32 %v457_v18, 0.0  ;;  %v461_v26 = vadd.f32 %v460_v23, %v321_v8  ;;  %v462_v27 = vpop.f32.mrb[3].mxu1  ;;  %v2065_v3 = vld [vmem:[#allocation2 + $0x228] ss:$12 sps:$4 sm:$0xff]  }
 0x10c   : > { %v469_v17 = vmax.f32 %v418_v12, 0.0  ;;  %v468_v31 = vmax.f32 %v459_v22, 0.0  ;;  %v463_v32 = vadd.f32 %v462_v27, %v325_v11  ;;  %v2070_v6 = vld [vmem:[#allocation2 + $0x240] ss:$12 sps:$4 sm:$0xff]   ;;  %v2073_v8 = vld [vmem:[#allocation2 + $0x258] ss:$12 sps:$4 sm:$0xff]  }
 0x10d   : > { %v470_v21 = vmax.f32 %v420_v14, 0.0  ;;  %v471_v35 = vmax.f32 %v461_v26, 0.0  ;;  %v2078_v9 = vld [vmem:[#allocation2 + $0x274] ss:$12 sps:$4 sm:$0xff]   ;;  %v2076_v10 = vld [vmem:[#allocation2 + $0x270] ss:$12 sps:$4 sm:$0xff]  }
 0x10e   : > { %v473_v24 = vpack.c.bf16 %v469_v17, %v465_v16  ;;  %v472_v36 = vmax.f32 %v463_v32, 0.0  ;;  %v2081_v11 = vld [vmem:[#allocation2 + $0x28c] ss:$12 sps:$4 sm:$0xff]   ;;  %v2079_v12 = vld [vmem:[#allocation2 + $0x288] ss:$12 sps:$4 sm:$0xff]   ;;  %v2095_v22 = vld [vmem:[%s2415_s5] sm:$0xff]  }
 0x10f   : > { %v474_v28 = vpack.c.bf16 %v470_v21, %v466_v20  ;;  %v2305_v37 = vpack.c.bf16 %v471_v35, %v467_v25  ;;  %v2084_v13 = vld [vmem:[#allocation2 + $0x2a4] ss:$12 sps:$4 sm:$0xff]   ;;  %v2082_v14 = vld [vmem:[#allocation2 + $0x2a0] ss:$12 sps:$4 sm:$0xff]   ;;  %v2087_v15 = vld [vmem:[#allocation2 + $0x2bc] ss:$12 sps:$4 sm:$0xff]  }
 0x110   : > { %v476_v40 = vpack.c.bf16 %v472_v36, %v468_v31  ;;  %v2085_v16 = vld [vmem:[#allocation2 + $0x2b8] ss:$12 sps:$4 sm:$0xff]   ;;  %v2090_v17 = vld [vmem:[#allocation2 + $0x2d4] ss:$12 sps:$4 sm:$0xff]   ;;  %v2088_v18 = vld [vmem:[#allocation2 + $0x2d0] ss:$12 sps:$4 sm:$0xff]  }
 0x111   : > { %1166 = vmatprep.mubr.bf16.mxu0 %v474_v28  ;;  %1252 = vmatprep.mubr.bf16.mxu1 %v474_v28  ;;  %v2093_v19 = vld [vmem:[#allocation2 + $0x2ec] ss:$12 sps:$4 sm:$0xff]   ;;  %v2091_v20 = vld [vmem:[#allocation2 + $0x2e8] ss:$12 sps:$4 sm:$0xff]   ;;  %v2094_v21 = vld [vmem:[%s2415_s5 + $0x40] sm:$0xff]  }
 0x112   : > { %1167 = vmatmul.mubr.bf16.vlgmr.msra.gmra.mrb[4].mxu0 %v473_v24  ;;  %1253 = vmatmul.mubr.bf16.vlgmr.msra.gmra.mrb[4].mxu1 %v473_v24  ;;  %v2096_v23 = vld [vmem:[%s2415_s5 + $0x48] sm:$0xff]   ;;  %v2098_v25 = vld [vmem:[%s2415_s5 + $0x50] sm:$0xff]   ;;  %v2100_v27 = vld [vmem:[%s2415_s5 + $0x58] sm:$0xff]  }
 0x113   : > { %1178 = vmatpush1.bf16.msra.mxu0 %v2030_v29  ;;  %1849 = vmatpush3.bf16.msra.mxu1 %v2034_v30  ;;  %v2097_v24 = vld [vmem:[%s2415_s5 + $0x8] sm:$0xff]   ;;  %v2099_v26 = vld [vmem:[%s2415_s5 + $0x10] sm:$0xff]   ;;  %v2101_v28 = vld [vmem:[%s2415_s5 + $0x18] sm:$0xff]  }
 0x114   : > { %1179 = vmatprep.subr.bf16.mxu0 %v2037_v33  ;;  %1850 = vmatprep.subr.bf16.mxu1 %v2038_v34  ;;  %v2102_v29 = vld [vmem:[%s2415_s5 + $0x60] sm:$0xff]   ;;  %v2104_v31 = vld [vmem:[%s2415_s5 + $0x68] sm:$0xff]   ;;  %v2106_v33 = vld [vmem:[%s2415_s5 + $0x70] sm:$0xff]  }
 0x115   : > { %1293 = vmatprep.mubr.bf16.mxu1 %v476_v40  ;;  %1209 = vmatprep.mubr.bf16.mxu0 %v476_v40  ;;  %v2103_v30 = vld [vmem:[%s2415_s5 + $0x20] sm:$0xff]   ;;  %v2105_v32 = vld [vmem:[%s2415_s5 + $0x28] sm:$0xff]   ;;  %v2107_v34 = vld [vmem:[%s2415_s5 + $0x30] sm:$0xff]  }
 0x116   : > { %v2108_v35 = vld [vmem:[%s2415_s5 + $0x78] sm:$0xff]  }
 0x117   : > { %1180 = vmatpush1.bf16.msra.mxu0 %v2035_v38  ;;  %1851 = vmatpush3.bf16.msra.mxu1 %v2039_v39  ;;  %v2109_v36 = vld [vmem:[%s2415_s5 + $0x38] sm:$0xff]  }
 0x118   : > { %1181 = vmatprep.subr.bf16.mxu0 %v2042_v41  ;;  %1852 = vmatprep.subr.bf16.mxu1 %v2043_v42 }
 0x11b   : > { %1182 = vmatpush1.bf16.msra.mxu0 %v2040_v43  ;;  %1853 = vmatpush3.bf16.msra.mxu1 %v2044_v44  ;;  %v605_v44 = vld [vmem:[%s2414_s4] sm:$0x7] }
 0x11c   : > { %1183 = vmatprep.subr.bf16.mxu0 %v2047_v45  ;;  %1854 = vmatprep.subr.bf16.mxu1 %v2048_v46  ;;  %v618_v45 = vrot.slane %v605_v44, %v320_v2 }
 0x11f   : > { %1184 = vmatpush1.bf16.msra.mxu0 %v2045_v47  ;;  %1855 = vmatpush3.bf16.msra.mxu1 %v2049_v48 }
 0x120   : > { %1185 = vmatprep.subr.bf16.mxu0 %v2052_v49  ;;  %1856 = vmatprep.subr.bf16.mxu1 %v2053_v50 }
 0x123   : > { %1186 = vmatpush1.bf16.msra.mxu0 %v2050_v51  ;;  %1857 = vmatpush3.bf16.msra.mxu1 %v2054_v52 }
 0x124   : > { %1187 = vmatprep.subr.bf16.mxu0 %v2057_v53  ;;  %1858 = vmatprep.subr.bf16.mxu1 %v2058_v54 }
 0x127   : > { %1188 = vmatpush1.bf16.msra.mxu0 %v2055_v55  ;;  %1859 = vmatpush3.bf16.msra.mxu1 %v2059_v56 }
 0x128   : > { %1189 = vmatprep.subr.bf16.mxu0 %v2062_v57  ;;  %1860 = vmatprep.subr.bf16.mxu1 %v2063_v58 }
 0x12b   : > { %1190 = vmatpush1.bf16.msra.mxu0 %v2060_v59  ;;  %1861 = vmatpush3.bf16.msra.mxu1 %v2064_v60  ;;  %v610_v59 = vrot.slane %v605_v44, %v312_v62  ;;  %v614_v60 = vrot.slane %v605_v44, %v316_v0  ;;  %v2110_v62 = vld [vmem:[%s2415_s5 + $0x80] sm:$0xff]   ;;  %v2112_v0 = vld [vmem:[%s2415_s5 + $0x90] sm:$0xff]  }
 0x12c   : > { %1191 = vmatprep.subr.bf16.mxu0 %v2067_v63  ;;  %1862 = vmatprep.subr.bf16.mxu1 %v2068_v1 }
 0x12f   : > { %1192 = vmatpush1.bf16.msra.mxu0 %v2065_v3  ;;  %1863 = vmatpush3.bf16.msra.mxu1 %v2069_v4 }
 0x130   : > { %1193 = vmatprep.subr.bf16.mxu0 %v2072_v5  ;;  %1870 = vmatprep.subr.bf16.mxu1 %v2094_v21 }
 0x132   : > { %1294 = vmatmul.mubr.bf16.vlgmr.msra.gmra.mrb[8].mxu1 %v2305_v37 }
 0x133   : > { %1194 = vmatpush1.bf16.msra.mxu0 %v2070_v6  ;;  %1871 = vmatpush3.bf16.msra.mxu1 %v2095_v22 }
 0x134   : > { %1195 = vmatprep.subr.bf16.mxu0 %v2075_v7  ;;  %1872 = vmatprep.subr.bf16.mxu1 %v2096_v23 }
 0x137   : > { %1196 = vmatpush1.bf16.msra.mxu0 %v2073_v8  ;;  %1873 = vmatpush3.bf16.msra.mxu1 %v2097_v24 }
 0x138   : > { %1197 = vmatprep.subr.bf16.mxu0 %v2078_v9  ;;  %1874 = vmatprep.subr.bf16.mxu1 %v2098_v25  ;;  %v1790_v25 = vld [vmem:[%s2416_s6] ss:$0 sm:$0xff] }
 0x13b   : > { %1198 = vmatpush1.bf16.msra.mxu0 %v2076_v10  ;;  %1875 = vmatpush3.bf16.msra.mxu1 %v2099_v26 }
 0x13c   : > { %1199 = vmatprep.subr.bf16.mxu0 %v2081_v11  ;;  %1876 = vmatprep.subr.bf16.mxu1 %v2100_v27 }
 0x13f   : > { %1200 = vmatpush1.bf16.msra.mxu0 %v2079_v12  ;;  %1877 = vmatpush3.bf16.msra.mxu1 %v2101_v28 }
 0x140   : > { %1201 = vmatprep.subr.bf16.mxu0 %v2084_v13  ;;  %1878 = vmatprep.subr.bf16.mxu1 %v2102_v29 }
 0x143   : > { %1202 = vmatpush1.bf16.msra.mxu0 %v2082_v14  ;;  %1879 = vmatpush3.bf16.msra.mxu1 %v2103_v30  ;;  %v2113_v14 = vld [vmem:[%s2415_s5 + $0x98] sm:$0xff]  }
 0x144   : > { %1203 = vmatprep.subr.bf16.mxu0 %v2087_v15  ;;  %1880 = vmatprep.subr.bf16.mxu1 %v2104_v31  ;;  %v2114_v15 = vld [vmem:[%s2415_s5 + $0xa0] sm:$0xff]  }
 0x147   : > { %1204 = vmatpush1.bf16.msra.mxu0 %v2085_v16  ;;  %1881 = vmatpush3.bf16.msra.mxu1 %v2105_v32  ;;  %v2115_v16 = vld [vmem:[%s2415_s5 + $0xa8] sm:$0xff]  }
 0x148   : > { %1205 = vmatprep.subr.bf16.mxu0 %v2090_v17  ;;  %1882 = vmatprep.subr.bf16.mxu1 %v2106_v33  ;;  %v2116_v17 = vld [vmem:[%s2415_s5 + $0xb0] sm:$0xff]  }
 0x14b   : > { %1206 = vmatpush1.bf16.msra.mxu0 %v2088_v18  ;;  %1883 = vmatpush3.bf16.msra.mxu1 %v2107_v34  ;;  %v2117_v18 = vld [vmem:[%s2415_s5 + $0xb8] sm:$0xff]  }
 0x14c   : > { %1207 = vmatprep.subr.bf16.mxu0 %v2093_v19  ;;  %1884 = vmatprep.subr.bf16.mxu1 %v2108_v35 }
 0x14f   : > { %1208 = vmatpush1.bf16.msra.mxu0 %v2091_v20  ;;  %1885 = vmatpush3.bf16.msra.mxu1 %v2109_v36 }
 0x152   : > { %1210 = vmatmul.mubr.bf16.vlgmr.msra.gmra.mrb[4].mxu0 %v2305_v37  ;;  %v2166_v37 = vmov 0.0  }
 0x153   : > { %1901 = vmatprep.subr.bf16.mxu1 %v2166_v37 }
 0x1e5   : > { %v1842_v38 = vpop.f32.mrb[4].mxu1 }
 0x1e6   : > { %v1843_v39 = vpop.f32.mrb[5].mxu1 }
 0x1e7   : > { %v1844_v40 = vadd.f32 %v1843_v39, %v1842_v38  ;;  %v1845_v41 = vpop.f32.mrb[6].mxu1 }
 0x1e8   : > { %v1846_v42 = vpop.f32.mrb[7].mxu1 }
 0x1e9   : > { %v1847_v43 = vadd.f32 %v1846_v42, %v1845_v41  ;;  %v1255_v48 = vadd.f32 %v1844_v40, %v618_v45 }
 0x1eb   : > { %v1258_v52 = vadd.f32 %v1847_v43, %v618_v45 }
 0x205   : > { %v1864_v46 = vpop.f32.mrb[8].mxu1 }
 0x206   : > { %v1865_v47 = vpop.f32.mrb[9].mxu1 }
 0x207   : > { %v1866_v49 = vadd.f32 %v1865_v47, %v1864_v46  ;;  %v1867_v50 = vpop.f32.mrb[10].mxu1 }
 0x208   : > { %v1868_v51 = vpop.f32.mrb[11].mxu1 }
 0x209   : > { %v1296_v53 = vadd.f32 %v1866_v49, %v1255_v48  ;;  %v1869_v54 = vadd.f32 %v1868_v51, %v1867_v50 }
 0x20b   : > { %v1299_v55 = vadd.f32 %v1869_v54, %v1258_v52  ;;  %v1304_v56 = vmax.f32 %v1296_v53, 0.0 }
 0x20d   : > { %v1307_v57 = vmax.f32 %v1299_v55, 0.0 }
 0x20f   : > { %v1310_v58 = vpack.c.bf16 %v1307_v57, %v1304_v56 }
 0x225   : > { %v1211_v2 = vpop.f32.mrb[4].mxu0 }
 0x226   : > { %v1921_v63 = vadd.f32 %v1211_v2, %v610_v59  ;;  %v1213_v1 = vpop.f32.mrb[5].mxu0 }
 0x227   : > { %v1922_v3 = vadd.f32 %v1213_v1, %v614_v60  ;;  %v1215_v4 = vpop.f32.mrb[6].mxu0 }
 0x228   : > { %v1923_v5 = vadd.f32 %v1215_v4, %v610_v59  ;;  %v1217_v6 = vpop.f32.mrb[7].mxu0  ;;  %v1302_v8 = vmax.f32 %v1921_v63, 0.0 }
 0x229   : > { %v1924_v7 = vadd.f32 %v1217_v6, %v614_v60  ;;  %v1303_v10 = vmax.f32 %v1922_v3, 0.0 }
 0x22a   : > { %v1305_v9 = vmax.f32 %v1923_v5, 0.0 }
 0x22b   : > { %v1306_v11 = vmax.f32 %v1924_v7, 0.0 }
 0x22c   : > { %v1308_v12 = vpack.c.bf16 %v1305_v9, %v1302_v8 }
 0x22d   : > { %v1309_v13 = vpack.c.bf16 %v1306_v11, %v1303_v10 }
 0x22f   : > { %1542 = vmatprep.mubr.bf16.mxu1 %v1309_v13 }
 0x230   : > { %1543 = vmatmul.mubr.bf16.vlgmr.msra.gmra.mrb[12].mxu1 %v1308_v12 }
 0x231   : > { %1902 = vmatpush3.bf16.msra.mxu1 %v2110_v62  ;;  %1917 = vmatprep.mubr.msk.bf16.mxu1 %vm2167_vm1, %v2166_v37 }
 0x232   : > { %1903 = vmatprep.subr.bf16.mxu1 %v2166_v37 }
 0x235   : > { %1904 = vmatpush3.bf16.msra.mxu1 %v2111_v61 }
 0x236   : > { %1905 = vmatprep.subr.bf16.mxu1 %v2166_v37 }
 0x239   : > { %1906 = vmatpush3.bf16.msra.mxu1 %v2112_v0 }
 0x23a   : > { %1907 = vmatprep.subr.bf16.mxu1 %v2166_v37 }
 0x23d   : > { %1908 = vmatpush3.bf16.msra.mxu1 %v2113_v14 }
 0x23e   : > { %1909 = vmatprep.subr.bf16.mxu1 %v2166_v37 }
 0x241   : > { %1910 = vmatpush3.bf16.msra.mxu1 %v2114_v15 }
 0x242   : > { %1911 = vmatprep.subr.bf16.mxu1 %v2166_v37 }
 0x245   : > { %1912 = vmatpush3.bf16.msra.mxu1 %v2115_v16 }
 0x246   : > { %1913 = vmatprep.subr.bf16.mxu1 %v2166_v37 }
 0x249   : > { %1914 = vmatpush3.bf16.msra.mxu1 %v2116_v17 }
 0x24a   : > { %1915 = vmatprep.subr.bf16.mxu1 %v2166_v37 }
 0x24d   : > { %1916 = vmatpush3.bf16.msra.mxu1 %v2117_v18 }
 0x250   : > { %1918 = vmatmul.mubr.bf16.vlgmr.msra.gmra.mrb[16].mxu1 %v1310_v58 }
 0x303   : > { %v1886_v19 = vpop.f32.mrb[12].mxu1 }
 0x304   : > { %v1887_v20 = vpop.f32.mrb[13].mxu1 }
 0x305   : > { %v1888_v21 = vadd.f32 %v1887_v20, %v1886_v19  ;;  %v1889_v22 = vpop.f32.mrb[14].mxu1 }
 0x306   : > { %v1890_v23 = vpop.f32.mrb[15].mxu1 }
 0x307   : > { %v1891_v24 = vadd.f32 %v1890_v23, %v1889_v22  ;;  %v1545_v26 = vadd.f32 %v1888_v21, %v1790_v25 }
 0x309   : > { %v1548_v30 = vadd.f32 %v1891_v24, %v1790_v25 }
 0x323   : > { %v1585_v27 = vpop.f32.mrb[16].mxu1 }
 0x324   : > { %v1586_v28 = vadd.f32 %v1585_v27, %v1545_v26  ;;  %v1919_v29 = vpop.f32.mrb[17].mxu1 }
 0x325   : > { %v1588_v31 = vpop.f32.mrb[18].mxu1 }
 0x326   : > { %v1589_v32 = vadd.f32 %v1588_v31, %v1548_v30  ;;  %v1920_v33 = vpop.f32.mrb[19].mxu1  ;;  %2118 = vtanh.f32 %v1586_v28 }
 0x328   : > { %2120 = vtanh.f32 %v1589_v32 }
 0x330   : > { %v2119_v34 = vpop.eup %2118 }
 0x332   : > { %v2121_v35 = vpop.eup %2120 }
 0x333   : > { %v1824_v36 = vpack.c.bf16 %v2121_v35, %v2119_v34 }
 0x335   : > { %1825 = vst [vmem:[%s295_s15] sm:$0xff] %v1824_v36  }
 0x336 PF: > { %s18_s24 = sadd.s32 1, %s2160_s24  }
 0x337   : > { %p15_p3 = scmp.ge.s32.totalorder %s18_s24, 4  }
 0x339   :  { %17 = sbr.rel (!%p15_p3) target bundleno = 1 (0x1), region = 83 }
 0x340   :  { %1626 = vsyncpa [#allocation3], 1 }
 0x341   :  { %1628 = vsyncpa [#allocation3 + $0x1], 1 }

</bundles_post_ra>
